<compile_context>
chip_gen: v7x
topology: tpu7x:2x2x1
jax: 0.10.0
libtpu: 0.0.40
codegen_flags: <defaults>
</compile_context>

<pallas_src>
import functools

import numpy as np
import jax
import jax.numpy as jnp
from jax.experimental import pallas as pl
from jax.experimental.pallas import tpu as pltpu

_LANES = 128
_TARGET_X_BLOCK_BYTES = 2 * 1024 * 1024  # ~2 MiB of logits per grid step


def _pow(v, gamma):
    """v**gamma for v >= 0. Integer gamma -> repeated multiplication (no EUP pow)."""
    g = float(gamma)
    if g == int(g) and 0.0 <= g <= 16.0:
        gi = int(g)
        if gi == 0:
            return jnp.ones_like(v)
        out = None
        base = v
        while gi:
            if gi & 1:
                out = base if out is None else out * base
            gi >>= 1
            if gi:
                base = base * base
        return out
    # general gamma: exp(g*log(v)); log(0) = -inf -> exp(-inf) = 0, matching pow(0,g).
    return jnp.exp(jnp.float32(g) * jnp.log(v))


def _softmax_ce_common(x_ref, t_ref, num_classes, alpha):
    """Shared softmax / cross-entropy math on one (C, TR, 128) tile."""
    C = num_classes
    t = t_ref[0, 0]                               # (TR, L) int32 class indices
    xs = [x_ref[0, c] for c in range(C)]          # C x (TR, L) f32 logits

    # numerically stable log-sum-exp over the (leading) channel axis -> pure VPU
    m = xs[0]
    for c in range(1, C):
        m = jnp.maximum(m, xs[c])
    es = [jnp.exp(xs[c] - m) for c in range(C)]
    sumexp = es[0]
    for c in range(1, C):
        sumexp = sumexp + es[c]
    lse = m + jnp.log(sumexp)
    inv = 1.0 / sumexp

    zeros = jnp.zeros_like(m)
    x_t = zeros
    p_t = zeros
    w_t = zeros
    ps = []
    for c in range(C):
        p_c = es[c] * inv                         # softmax prob of class c
        ps.append(p_c)
        is_c = t == c
        x_t = jnp.where(is_c, xs[c], x_t)
        p_t = jnp.where(is_c, p_c, p_t)
        if alpha is not None:
            w_t = jnp.where(is_c, jnp.float32(alpha[c]), w_t)

    ce = lse - x_t                                # -log_softmax at the target class
    if alpha is not None:
        ce = ce * w_t                             # F.cross_entropy weight=alpha
    return t, ps, p_t, ce


def _focal_reduce_kernel(x_ref, t_ref, part_ref, *, num_classes, gamma, alpha, has_pad):
    """Partial-sum variant ('elementwise_mean' / 'sum'): writes (1,128) partial."""
    C = num_classes
    t, ps, p_t, ce = _softmax_ce_common(x_ref, t_ref, C, alpha)

    # sum_c fw_c = (1 - p_t)^g - p_t^g + sum_c p_c^g  (folded over channels)
    sum_pow = _pow(ps[0], gamma)
    for c in range(1, C):
        sum_pow = sum_pow + _pow(ps[c], gamma)
    fw_sum = _pow(1.0 - p_t, gamma) - _pow(p_t, gamma) + sum_pow

    contrib = ce * fw_sum                         # (TR, L): sum over channels per pixel
    if has_pad:
        contrib = jnp.where(t >= 0, contrib, 0.0)  # padded pixels carry target -1
    part_ref[0, 0] = jnp.sum(contrib, axis=0, keepdims=True)   # (1, L)


def _focal_map_kernel(x_ref, t_ref, o_ref, *, num_classes, gamma, alpha):
    """Per-element variant (reduction='none'): writes the full (C, TR, 128) map."""
    C = num_classes
    t, ps, p_t, ce = _softmax_ce_common(x_ref, t_ref, C, alpha)
    for c in range(C):
        fw_c = _pow(jnp.where(t == c, 1.0 - ps[c], ps[c]), gamma)
        o_ref[0, c] = fw_c * ce


def focal_loss_with_logits_pallas(p, t, gamma=2.0, alpha=None,
                                  reduction="elementwise_mean"):
    """p: logits (N, C, *spatial) float; t: class indices (N, *spatial) int."""
    if reduction not in ("elementwise_mean", "sum", "none"):
        raise ValueError(f"invalid reduction: {reduction}")

    p = jnp.asarray(p, jnp.float32)
    t = jnp.asarray(t)
    N, C = int(p.shape[0]), int(p.shape[1])
    spatial = tuple(p.shape[2:])
    S = 1
    for d in spatial:
        S *= int(d)

    alpha_t = None
    if alpha is not None:
        alpha_t = tuple(float(a) for a in np.asarray(alpha).reshape(-1))
        assert len(alpha_t) == C, "alpha must have one weight per class"

    # ---- choose a lane-dense tiling: pixels -> (rows, 128), ~2 MiB logits per block
    R = -(-S // _LANES)
    tgt_rows = _TARGET_X_BLOCK_BYTES // (C * _LANES * 4)
    tgt_rows = max(8, min(1024, (tgt_rows // 8) * 8))
    if R <= tgt_rows:
        TR, R_pad, grid_s = R, R, 1               # single spatial block (full-dim exempt)
    else:
        TR = tgt_rows
        R_pad = -(-R // TR) * TR
        grid_s = R_pad // TR
    S_pad = R_pad * _LANES
    has_pad = S_pad != S

    p_flat = p.reshape(N, C, S)
    t_flat = t.reshape(N, S).astype(jnp.int32)
    if has_pad:
        # padded targets = -1 -> their contribution is zeroed in-kernel
        p_flat = jnp.pad(p_flat, ((0, 0), (0, 0), (0, S_pad - S)))
        t_flat = jnp.pad(t_flat, ((0, 0), (0, S_pad - S)), constant_values=-1)
    x4 = p_flat.reshape(N, C, R_pad, _LANES)
    t4 = t_flat.reshape(N, 1, R_pad, _LANES)

    x_spec = pl.BlockSpec((1, C, TR, _LANES), lambda n, s: (n, 0, s, 0))
    t_spec = pl.BlockSpec((1, 1, TR, _LANES), lambda n, s: (n, 0, s, 0))
    cparams = pltpu.CompilerParams(
        dimension_semantics=("parallel", "parallel"),
        vmem_limit_bytes=48 * 1024 * 1024,
    )

    if reduction == "none":
        kernel = functools.partial(_focal_map_kernel, num_classes=C,
                                   gamma=float(gamma), alpha=alpha_t)
        loss_map = pl.pallas_call(
            kernel,
            out_shape=jax.ShapeDtypeStruct((N, C, R_pad, _LANES), jnp.float32),
            grid=(N, grid_s),
            in_specs=[x_spec, t_spec],
            out_specs=pl.BlockSpec((1, C, TR, _LANES), lambda n, s: (n, 0, s, 0)),
            compiler_params=cparams,
        )(x4, t4)
        loss_map = loss_map.reshape(N, C, S_pad)[:, :, :S].reshape((N, C) + spatial)
        return loss_map

    kernel = functools.partial(_focal_reduce_kernel, num_classes=C,
                               gamma=float(gamma), alpha=alpha_t, has_pad=has_pad)
    partials = pl.pallas_call(
        kernel,
        out_shape=jax.ShapeDtypeStruct((N, grid_s, 1, _LANES), jnp.float32),
        grid=(N, grid_s),
        in_specs=[x_spec, t_spec],
        out_specs=pl.BlockSpec((1, 1, 1, _LANES), lambda n, s: (n, s, 0, 0)),
        compiler_params=cparams,
    )(x4, t4)
    total = jnp.sum(partials)                     # tiny final reduce in the wrapper
    if reduction == "sum":
        return total
    return total / jnp.float32(N * C * S)         # mean over all N*C*S elements


class FocalLossWithLogits:
    """JAX/Pallas port of dlutils FocalLossWithLogits (multi-class focal loss with logits)."""

    def __init__(self, alpha=None, gamma=2, reduction="elementwise_mean"):
        self.alpha = alpha
        self.gamma = gamma
        self.reduction = reduction

    def __call__(self, p, t):
        return focal_loss_with_logits_pallas(p, t, gamma=self.gamma,
                                             alpha=self.alpha,
                                             reduction=self.reduction)


def _reference(p, t, gamma=2.0, alpha=None, reduction="elementwise_mean"):
    """Pure-JAX reference matching the PyTorch module."""
    p = p.astype(jnp.float32)
    C = p.shape[1]
    logsm = jax.nn.log_softmax(p, axis=1)
    sm = jnp.exp(logsm)
    t_oh = jax.nn.one_hot(t, C, axis=1, dtype=jnp.float32)      # (N, C, ...)
    ce = -jnp.sum(t_oh * logsm, axis=1)                         # (N, ...)
    if alpha is not None:
        w = jnp.asarray(alpha, jnp.float32)[t]
        ce = ce * w
    fw = jnp.where(t_oh == 1.0, 1.0 - sm, sm) ** gamma
    loss = fw * ce[:, None, ...]
    if reduction == "elementwise_mean":
        return jnp.mean(loss)
    if reduction == "sum":
        return jnp.sum(loss)
    return loss


if __name__ == "__main__":
    key = jax.random.PRNGKey(0)
    k1, k2 = jax.random.split(key)
    N, C, H, W = 2, 4, 16, 16
    logits = jax.random.normal(k1, (N, C, H, W), jnp.float32)
    targets = jax.random.randint(k2, (N, H, W), 0, C, jnp.int32)

    # default module config: alpha=None, gamma=2, reduction='elementwise_mean'
    out = FocalLossWithLogits(alpha=None, gamma=2,
                              reduction="elementwise_mean")(logits, targets)
    jax.block_until_ready(out)
    ref = _reference(logits, targets, gamma=2.0, alpha=None,
                     reduction="elementwise_mean")
    assert jnp.allclose(out, ref, rtol=1e-4, atol=1e-6), (out, ref)

    # per-class alpha weights + sum reduction
    alpha = [0.1, 0.2, 0.3, 0.4]
    out_a = FocalLossWithLogits(alpha=alpha, gamma=2, reduction="sum")(logits, targets)
    jax.block_until_ready(out_a)
    ref_a = _reference(logits, targets, gamma=2.0, alpha=alpha, reduction="sum")
    assert jnp.allclose(out_a, ref_a, rtol=1e-4, atol=1e-5), (out_a, ref_a)

    # per-element map (reduction='none')
    out_m = FocalLossWithLogits(alpha=None, gamma=2, reduction="none")(logits, targets)
    jax.block_until_ready(out_m)
    ref_m = _reference(logits, targets, gamma=2.0, alpha=None, reduction="none")
    assert out_m.shape == ref_m.shape, (out_m.shape, ref_m.shape)
    assert jnp.allclose(out_m, ref_m, rtol=1e-4, atol=1e-6), "per-element map mismatch"

    print("KERNEL_OK")
</pallas_src>

<mosaic_0001>
module attributes {stable_mosaic.version = 11 : i64} {
  func.func @_focal_reduce_kernel(%arg0: i32, %arg1: i32, %arg2: memref<1x4x2x128xf32, #tpu.memory_space<vmem>>, %arg3: memref<1x1x2x128xi32, #tpu.memory_space<vmem>>, %arg4: memref<1x1x1x128xf32, #tpu.memory_space<vmem>>) attributes {dimension_semantics = [#tpu.dimension_semantics<parallel>, #tpu.dimension_semantics<parallel>], iteration_bounds = array<i64: 2, 1>, scalar_prefetch = 0 : i64, scratch_operands = 0 : i64, tpu.core_type = #tpu.core_type<tc>, window_params = [{transform_indices = @transform_0, window_bounds = array<i64: 1, 4, 2, 128>}, {transform_indices = @transform_1, window_bounds = array<i64: 1, 1, 2, 128>}, {transform_indices = @transform_2, window_bounds = array<i64: 1, 1, 1, 128>}]} {
    %c0 = arith.constant 0 : index
    %c0_0 = arith.constant 0 : index
    %c0_1 = arith.constant 0 : index
    %c0_2 = arith.constant 0 : index
    %0 = vector.load %arg3[%c0, %c0_0, %c0_1, %c0_2] : memref<1x1x2x128xi32, #tpu.memory_space<vmem>>, vector<1x1x2x128xi32>
    %1 = vector.shape_cast %0 : vector<1x1x2x128xi32> to vector<2x128xi32>
    %c0_3 = arith.constant 0 : index
    %c0_4 = arith.constant 0 : index
    %c0_5 = arith.constant 0 : index
    %c0_6 = arith.constant 0 : index
    %2 = vector.load %arg2[%c0_3, %c0_4, %c0_5, %c0_6] : memref<1x4x2x128xf32, #tpu.memory_space<vmem>>, vector<1x1x2x128xf32>
    %3 = vector.shape_cast %2 : vector<1x1x2x128xf32> to vector<2x128xf32>
    %c0_7 = arith.constant 0 : index
    %c1 = arith.constant 1 : index
    %c0_8 = arith.constant 0 : index
    %c0_9 = arith.constant 0 : index
    %4 = vector.load %arg2[%c0_7, %c1, %c0_8, %c0_9] : memref<1x4x2x128xf32, #tpu.memory_space<vmem>>, vector<1x1x2x128xf32>
    %5 = vector.shape_cast %4 : vector<1x1x2x128xf32> to vector<2x128xf32>
    %c0_10 = arith.constant 0 : index
    %c2 = arith.constant 2 : index
    %c0_11 = arith.constant 0 : index
    %c0_12 = arith.constant 0 : index
    %6 = vector.load %arg2[%c0_10, %c2, %c0_11, %c0_12] : memref<1x4x2x128xf32, #tpu.memory_space<vmem>>, vector<1x1x2x128xf32>
    %7 = vector.shape_cast %6 : vector<1x1x2x128xf32> to vector<2x128xf32>
    %c0_13 = arith.constant 0 : index
    %c3 = arith.constant 3 : index
    %c0_14 = arith.constant 0 : index
    %c0_15 = arith.constant 0 : index
    %8 = vector.load %arg2[%c0_13, %c3, %c0_14, %c0_15] : memref<1x4x2x128xf32, #tpu.memory_space<vmem>>, vector<1x1x2x128xf32>
    %9 = vector.shape_cast %8 : vector<1x1x2x128xf32> to vector<2x128xf32>
    %10 = arith.maximumf %3, %5 : vector<2x128xf32>
    %11 = arith.maximumf %10, %7 : vector<2x128xf32>
    %12 = arith.maximumf %11, %9 : vector<2x128xf32>
    %13 = arith.subf %3, %12 : vector<2x128xf32>
    %14 = math.exp %13 : vector<2x128xf32>
    %15 = arith.subf %5, %12 : vector<2x128xf32>
    %16 = math.exp %15 : vector<2x128xf32>
    %17 = arith.subf %7, %12 : vector<2x128xf32>
    %18 = math.exp %17 : vector<2x128xf32>
    %19 = arith.subf %9, %12 : vector<2x128xf32>
    %20 = math.exp %19 : vector<2x128xf32>
    %21 = arith.addf %14, %16 : vector<2x128xf32>
    %22 = arith.addf %21, %18 : vector<2x128xf32>
    %23 = arith.addf %22, %20 : vector<2x128xf32>
    %24 = math.log %23 : vector<2x128xf32>
    %25 = arith.addf %12, %24 : vector<2x128xf32>
    %cst = arith.constant 1.000000e+00 : f32
    %26 = vector.broadcast %cst : f32 to vector<2x128xf32>
    %27 = arith.divf %26, %23 : vector<2x128xf32>
    %cst_16 = arith.constant 0.000000e+00 : f32
    %28 = vector.broadcast %cst_16 : f32 to vector<2x128xf32>
    %29 = arith.mulf %14, %27 : vector<2x128xf32>
    %c0_i32 = arith.constant 0 : i32
    %30 = vector.broadcast %c0_i32 : i32 to vector<2x128xi32>
    %31 = arith.cmpi eq, %1, %30 : vector<2x128xi32>
    %32 = arith.select %31, %3, %28 : vector<2x128xi1>, vector<2x128xf32>
    %33 = arith.select %31, %29, %28 : vector<2x128xi1>, vector<2x128xf32>
    %34 = arith.mulf %16, %27 : vector<2x128xf32>
    %c1_i32 = arith.constant 1 : i32
    %35 = vector.broadcast %c1_i32 : i32 to vector<2x128xi32>
    %36 = arith.cmpi eq, %1, %35 : vector<2x128xi32>
    %37 = arith.select %36, %5, %32 : vector<2x128xi1>, vector<2x128xf32>
    %38 = arith.select %36, %34, %33 : vector<2x128xi1>, vector<2x128xf32>
    %39 = arith.mulf %18, %27 : vector<2x128xf32>
    %c2_i32 = arith.constant 2 : i32
    %40 = vector.broadcast %c2_i32 : i32 to vector<2x128xi32>
    %41 = arith.cmpi eq, %1, %40 : vector<2x128xi32>
    %42 = arith.select %41, %7, %37 : vector<2x128xi1>, vector<2x128xf32>
    %43 = arith.select %41, %39, %38 : vector<2x128xi1>, vector<2x128xf32>
    %44 = arith.mulf %20, %27 : vector<2x128xf32>
    %c3_i32 = arith.constant 3 : i32
    %45 = vector.broadcast %c3_i32 : i32 to vector<2x128xi32>
    %46 = arith.cmpi eq, %1, %45 : vector<2x128xi32>
    %47 = arith.select %46, %9, %42 : vector<2x128xi1>, vector<2x128xf32>
    %48 = arith.select %46, %44, %43 : vector<2x128xi1>, vector<2x128xf32>
    %49 = arith.subf %25, %47 : vector<2x128xf32>
    %50 = arith.mulf %29, %29 : vector<2x128xf32>
    %51 = arith.mulf %34, %34 : vector<2x128xf32>
    %52 = arith.addf %50, %51 : vector<2x128xf32>
    %53 = arith.mulf %39, %39 : vector<2x128xf32>
    %54 = arith.addf %52, %53 : vector<2x128xf32>
    %55 = arith.mulf %44, %44 : vector<2x128xf32>
    %56 = arith.addf %54, %55 : vector<2x128xf32>
    %cst_17 = arith.constant 1.000000e+00 : f32
    %57 = vector.broadcast %cst_17 : f32 to vector<2x128xf32>
    %58 = arith.subf %57, %48 : vector<2x128xf32>
    %59 = arith.mulf %58, %58 : vector<2x128xf32>
    %60 = arith.mulf %48, %48 : vector<2x128xf32>
    %61 = arith.subf %59, %60 : vector<2x128xf32>
    %62 = arith.addf %61, %56 : vector<2x128xf32>
    %63 = arith.mulf %49, %62 : vector<2x128xf32>
    %cst_18 = arith.constant dense<0.000000e+00> : vector<128xf32>
    %64 = vector.multi_reduction <add>, %63, %cst_18 [0] : vector<2x128xf32> to vector<128xf32>
    %65 = vector.shape_cast %64 : vector<128xf32> to vector<1x128xf32>
    %c0_19 = arith.constant 0 : index
    %c0_20 = arith.constant 0 : index
    %c0_21 = arith.constant 0 : index
    %c0_22 = arith.constant 0 : index
    %66 = vector.load %arg4[%c0_19, %c0_20, %c0_21, %c0_22] : memref<1x1x1x128xf32, #tpu.memory_space<vmem>>, vector<1x1x1x128xf32>
    %67 = vector.shape_cast %66 : vector<1x1x1x128xf32> to vector<1x128xf32>
    %68 = vector.shape_cast %65 : vector<1x128xf32> to vector<1x1x1x128xf32>
    tpu.vector_store %arg4[%c0_19, %c0_20, %c0_21, %c0_22], %68 {strides = array<i32>} : memref<1x1x1x128xf32, #tpu.memory_space<vmem>>, vector<1x1x1x128xf32>,
    return
  }
  func.func @transform_0(%arg0: i32, %arg1: i32) -> (i32, i32, i32, i32) {
    %c0_i32 = arith.constant 0 : i32
    %c0_i32_0 = arith.constant 0 : i32
    %c0_i32_1 = arith.constant 0 : i32
    return %arg0, %c0_i32, %arg1, %c0_i32_0 : i32, i32, i32, i32
  }
  func.func @transform_1(%arg0: i32, %arg1: i32) -> (i32, i32, i32, i32) {
    %c0_i32 = arith.constant 0 : i32
    %c0_i32_0 = arith.constant 0 : i32
    %c0_i32_1 = arith.constant 0 : i32
    return %arg0, %c0_i32, %arg1, %c0_i32_0 : i32, i32, i32, i32
  }
  func.func @transform_2(%arg0: i32, %arg1: i32) -> (i32, i32, i32, i32) {
    %c0_i32 = arith.constant 0 : i32
    %c0_i32_0 = arith.constant 0 : i32
    %c0_i32_1 = arith.constant 0 : i32
    return %arg0, %arg1, %c0_i32, %c0_i32_0 : i32, i32, i32, i32
  }
}

</mosaic_0001>

<bundles_post_ra>
// kernel: tpu_custom_call.1
= control target key start
LH: loop header
LB: loop body
LE: loop exit
PB: predicated region body
PF: predicated region fallthrough
CT: control target
= control target key end

     0   :  { %7 = vsyncpa [#allocation3], 0  ;;  %s890_s0 = inlined_call_operand.hbm [shape: f32[2,4,2,128], index: 0, kind: input, shape index: {}]   ;;  %s891_s1 = inlined_call_operand.hbm [shape: s32[2,1,2,128], index: 1, kind: input, shape index: {}]   ;;  %s892_s2 = inlined_call_operand.hbm [shape: f32[2,1,1,128], index: 2, kind: output, shape index: {}]  }
   0x1   :  { %9 = vsyncpa [#allocation3 + $0x1], 0 }
   0x2   :  { %10 = vsyncpa [#allocation6], 0 }
   0x3   :  { %12 = vsyncpa [#allocation6 + $0x1], 0 }
   0x4   :  { %13 = vsyncpa [#allocation4], 0 }
   0x5   :  { %15 = vsyncpa [#allocation4 + $0x1], 0  ;;  %s671_s9 = smov 0   ;;  %s673_s10 = smov 0  }
   0x6   :  { %s675_s11 = smov 0   ;;  %s677_s12 = smov 0  }
   0x7   :  { %s679_s13 = smov 0   ;;  %s681_s14 = smov 0  }
   0x8 LB: > { %s403_s15 = sadd.s32 4294967295, %s649_s14   ;;  %s404_s16 = sadd.s32 4294967294, %s649_s14   ;;  %s649_s14 = sphi %s681_s14, %s21_s14   ;;  %s645_s13 = sphi %s679_s13, %s911_s13   ;;  %s641_s12 = sphi %s677_s12, %s910_s12   ;;  %s637_s11 = sphi %s675_s11, %s909_s11   ;;  %s633_s10 = sphi %s673_s10, %s908_s10   ;;  %s629_s9 = sphi %s671_s9, %s907_s9  }
   0x9   : > { %s33_s17 = sadd.s32 1, %s645_s13  ;;  %s42_s18 = sadd.s32 1, %s637_s11 }
   0xa   : > { %p35_p0 = scmp.ge.s32.totalorder %s33_s17, 2  ;;  %p49_p1 = scmp.ne.s32.totalorder %s637_s11, %s633_s10 }
   0xb   : > { %p50_p2 = scmp.eq.s32.totalorder %s649_s14, 0  ;;  %p55_p3 = scmp.ne.s32.totalorder %s633_s10, %s629_s9 }
   0xc   : > { %s913_s17 = smov (%p35_p0, %s33_s17), 0  ;;  %p56_p5 = scmp.eq.s32.totalorder %s403_s15, 0 }
   0xd   : > { %p712_p4 = por %p50_p2, %p49_p1  ;;  %s37_s20 = ssub.s32 %s645_s13, %s913_s17 }
   0xe   : > { %p109_p6 = scmp.eq.s32.totalorder %s403_s15, 1  ;;  %p40_p7 = scmp.eq.s32.totalorder %s37_s20, 0 }
   0xf   : > { %p718_p8 = por %p56_p5, %p55_p3  ;;  %p115_p10 = scmp.eq.s32.totalorder %s404_s16, 1 }
  0x10   : > { %p722_p9 = por %p109_p6, %p49_p1  ;;  %p439_p13 = scmp.lt.s32.totalorder %s649_s14, 2 }
  0x11   : > { %s896_s21 = scalar_select %p718_p8, 1, 0 }
  0x12   : > { %s897_s22 = scalar_select %p722_p9, 1, 0 }
  0x13   : > { %s727_s23 = scalar_select %p40_p7, %s637_s11, %s42_s18  }
  0x14   : > { %p729_p11 = por %p115_p10, %p55_p3  ;;  %s736_s25 = sand.u32 1, %s637_s11  }
  0x15   : > { %s407_s26 = sshll.u32 %s736_s25, 3  ;;  %s421_s27 = sshll.u32 %s645_s13, 7 }
  0x16   : > { %s898_s24 = scalar_select %p729_p11, 1, 0 }
  0x17   : > { %s743_s30 = scalar_lea.hbm %s890_s0, %s421_s27  ;;  %s139_s3 = scalar_lea.vmem [#allocation2], %s407_s26 }
  0x18   : > { %s147_s4 = sshll.u32 %s139_s3, 4  ;;  %p749_p0 = pnand %p439_p13, %p712_p4  ;;  %s745_s4 = int_to_ptr.vmem [resolvable:$true] %s147_s4 }
  0x19   : > { %s136_s6 = scalar_lea.sflag [#allocation3], %s736_s25  ;;  %s503_s7 = scalar_lea.hbm %s743_s30, 128 }
  0x1a   : > { %p504_p2 = scmp.ne.s32.totalorder %s743_s30, %s503_s7  ;;  %p505_p3 = pneg %p749_p0 }
  0x1b   : > { %s508_s16 = scalar_lea.hbm %s890_s0, 256  ;;  %p509_p4 = scmp.lt.u32.totalorder %s743_s30, %s890_s0 }
  0x1c   : > { %p506_p5 = pnand %p505_p3, %p504_p2  ;;  %p510_p7 = scmp.lt.u32.totalorder %s508_s16, %s503_s7 }
  0x1d   : > { %p512_p13 = scmp.lt.u32.totalorder %s503_s7, %s743_s30 }
  0x1e   : > { %p507_p6 = pneg %p506_p5  ;;  %p511_p10 = por %p510_p7, %p509_p4 }
  0x20   : > { %p513_p12 = por %p512_p13, %p511_p10 }
  0x22   : > { %p514_p1 = pnand %p513_p12, %p507_p6 }
  0x24   : > { %517 = shalt.err (!%p514_p1)
}
  0x25   : > { %s518_s20 = scalar_lea.vmem %s745_s4, 128  ;;  %s651_s26 = smov [#allocation2]  }
  0x26   : > { %p519_p2 = scmp.ne.s32.totalorder %s745_s4, %s518_s20  ;;  %s523_s27 = sshll.u32 %s651_s26, 4  ;;  %s524_s27 = int_to_ptr.vmem [resolvable:$false] %s523_s27 }
  0x27   : > { %s525_s28 = scalar_lea.vmem %s524_s27, 256  ;;  %p526_p9 = scmp.lt.s32.totalorder %s745_s4, %s524_s27 }
  0x28   : > { %p521_p5 = pnand %p519_p2, %p505_p3  ;;  %p527_p4 = scmp.lt.s32.totalorder %s525_s28, %s518_s20 }
  0x2a   : > { %p522_p11 = pneg %p521_p5  ;;  %p528_p7 = por %p527_p4, %p526_p9 }
  0x2c   : > { %p529_p10 = pnand %p528_p7, %p522_p11 }
  0x2e   : > { %532 = shalt.err (!%p529_p10)
}
  0x2f   : > { %s652_s29 = smov 32   ;;  %s653_s3 = smov 2  }
  0x30   : > { %431 = dma.hbm_to_vmem [thread:$0]  (!%p749_p0), %s743_s30, 128, %s745_s4, %s136_s6, %s652_s29, %s652_s29, %s653_s3  }
  0x31   : > { %p174_p12 = scmp.lt.s32.totalorder %s649_s14, 3  ;;  %s410_s7 = sshll.u32 %s736_s25, 1 }
  0x32   : > { %s411_s8 = sshll.u32 %s645_s13, 5  ;;  %p900_p9 = scmp.ge.s32.totalorder %s649_s14, 1 }
  0x33   : > { %s794_s19 = scalar_lea.hbm %s891_s1, %s411_s8  ;;  %s161_s20 = scalar_lea.vmem [#allocation5], %s410_s7 }
  0x34   : > { %p787_p11 = pnand %p900_p9, %p174_p12  ;;  %s169_s26 = sshll.u32 %s161_s20, 4  ;;  %s170_s26 = int_to_ptr.vmem [resolvable:$true] %s169_s26 }
  0x35   : > { %s158_s30 = scalar_lea.sflag [#allocation6], %s736_s25  ;;  %s533_s4 = scalar_lea.hbm %s794_s19, 32 }
  0x36   : > { %s901_s15 = scalar_select %p787_p11, 1, 0 }
  0x37   : > { %p534_p1 = scmp.ne.s32.totalorder %s794_s19, %s533_s4  ;;  %s538_s28 = scalar_lea.hbm %s891_s1, 64 }
  0x38   : > { %p539_p2 = scmp.lt.u32.totalorder %s794_s19, %s891_s1  ;;  %p540_p5 = scmp.lt.u32.totalorder %s538_s28, %s533_s4 }
  0x39   : > { %p536_p6 = pnand %p534_p1, %p505_p3  ;;  %p542_p7 = scmp.lt.u32.totalorder %s533_s4, %s794_s19 }
  0x3a   : > { %p541_p4 = por %p540_p5, %p539_p2 }
  0x3b   : > { %p537_p13 = pneg %p536_p6 }
  0x3c   : > { %p543_p10 = por %p542_p7, %p541_p4 }
  0x3e   : > { %p544_p12 = pnand %p543_p10, %p537_p13 }
  0x40   : > { %547 = shalt.err (!%p544_p12)
}
  0x41   : > { %s548_s25 = scalar_lea.vmem %s170_s26, 32  ;;  %s654_s7 = smov [#allocation5]  }
  0x42   : > { %p549_p9 = scmp.ne.s32.totalorder %s170_s26, %s548_s25  ;;  %s553_s8 = sshll.u32 %s654_s7, 4  ;;  %s554_s8 = int_to_ptr.vmem [resolvable:$false] %s553_s8 }
  0x43   : > { %s555_s16 = scalar_lea.vmem %s554_s8, 64  ;;  %p556_p8 = scmp.lt.s32.totalorder %s170_s26, %s554_s8 }
  0x44   : > { %p551_p1 = pnand %p549_p9, %p505_p3  ;;  %p557_p11 = scmp.lt.s32.totalorder %s555_s16, %s548_s25 }
  0x46   : > { %p552_p6 = pneg %p551_p1  ;;  %p558_p2 = por %p557_p11, %p556_p8 }
  0x48   : > { %p559_p5 = pnand %p558_p2, %p552_p6 }
  0x4a   : > { %562 = shalt.err (!%p559_p5)
}
  0x4b   : > { %434 = dma.hbm_to_vmem [thread:$0]  (!%p749_p0), %s794_s19, 32, %s170_s26, %s158_s30  }
  0x4c   : > { %p902_p13 = scmp.ne.s32.totalorder %s901_s15, 0 }
  0x4d   : > { %s819_s18 = sand.u32 (!%p902_p13), 1, %s633_s10   ;;  %p903_p3 = scmp.ne.s32.totalorder (!%p902_p13), %s896_s21, 0 }
  0x4e   : > { %178 = sbr.rel (%p902_p13) target bundleno = 173 (0xad), region = 28  ;;  %s413_s20 = sshll.u32 (!%p902_p13), %s819_s18, 3 }
  0x4f   : > { %s181_s4 = scalar_lea.sflag (!%p902_p13), [#allocation3], %s819_s18  ;;  %s184_s6 = scalar_lea.vmem (!%p902_p13), [#allocation2], %s413_s20 }
  0x55   : > { %616 = dma.done.wait (%p903_p3), %s181_s4, 128  }
  0x56   : > { %618 = vsyncadd (%p903_p3), %s181_s4, 4294967168  ;;  %s414_s5 = sshll.u32 %s819_s18, 1  ;;  %s190_s15 = scalar_lea.sflag [#allocation6], %s819_s18 }
  0x57   : > { %s829_s19 = scalar_lea.vmem [#allocation5], %s414_s5 }
  0x58   : > { %620 = dma.done.wait (%p903_p3), %s190_s15, 32  }
  0x59   : > { %622 = vsyncadd (%p903_p3), %s190_s15, 4294967264  ;;  %v219_v0 = vld [vmem:[%s184_s6] sm:$0x3]  ;;  %v415_v1 = vld [vmem:[%s184_s6 + $0x2] sm:$0x3]  ;;  %vm279_vm4 = vcmask 1041408  }
  0x5a   : > { %v416_v2 = vld [vmem:[%s184_s6 + $0x4] sm:$0x3]  ;;  %v226_v3 = vmax.f32 %v219_v0, %v415_v1  ;;  %v417_v4 = vld [vmem:[%s184_s6 + $0x6] sm:$0x3]  ;;  %v218_v22 = vld [vmem:[%s829_s19] sm:$0x3] }
  0x5b   : > { %vm250_vm0 = vcmp.eq.s32.totalorder %v218_v22, 0  ;;  %vm254_vm1 = vcmp.eq.s32.totalorder %v218_v22, 1  ;;  %vm258_vm2 = vcmp.eq.s32.totalorder %v218_v22, 2  ;;  %vm262_vm3 = vcmp.eq.s32.totalorder %v218_v22, 3  ;;  %s217_s21 = scalar_lea.vmem [#allocation7], %s819_s18  ;;  %s418_s30 = sshll.u32 %s641_s12, 4 }
  0x5c   : > { %v227_v5 = vmax.f32 %v226_v3, %v416_v2  ;;  %v251_v24 = vsel %vm250_vm0, %v219_v0, 0.0  ;;  %s302_s26 = sshll.u32 %s217_s21, 4  ;;  %s843_s29 = scalar_lea.hbm %s892_s2, %s418_s30  ;;  %s838_s26 = int_to_ptr.vmem [resolvable:$true] %s302_s26 }
  0x5d   : > { %v255_v30 = vsel %vm254_vm1, %v415_v1, %v251_v24  ;;  %s289_s3 = scalar_lea.sflag [#allocation4], %s819_s18  ;;  %s563_s25 = scalar_lea.vmem %s838_s26, 16 }
  0x5e   : > { %v228_v6 = vmax.f32 %v227_v5, %v417_v4  ;;  %v259_v37 = vsel %vm258_vm2, %v416_v2, %v255_v30  ;;  %p564_p8 = scmp.ne.s32.totalorder %s838_s26, %s563_s25  ;;  %p904_p0 = scmp.ne.s32.totalorder %s897_s22, 0 }
  0x5f   : > { %v263_v46 = vsel %vm262_vm3, %v417_v4, %v259_v37  ;;  %s655_s12 = smov [#allocation7]  }
  0x60   : > { %v229_v7 = vsub.f32 %v219_v0, %v228_v6  ;;  %v232_v8 = vsub.f32 %v415_v1, %v228_v6  ;;  %v235_v9 = vsub.f32 %v416_v2, %v228_v6  ;;  %v238_v10 = vsub.f32 %v417_v4, %v228_v6  ;;  %p565_p11 = pnand %p564_p8, %p904_p0  ;;  %s567_s7 = sshll.u32 %s655_s12, 4  ;;  %s568_s7 = int_to_ptr.vmem [resolvable:$false] %s567_s7 }
  0x61   : > { %s569_s8 = scalar_lea.vmem %s568_s7, 32  ;;  %p570_p7 = scmp.lt.s32.totalorder %s838_s26, %s568_s7 }
  0x62   : > { %v230_v11 = vmul.f32 1.442695, %v229_v7  ;;  %v233_v12 = vmul.f32 1.442695, %v232_v8  ;;  %v236_v13 = vmul.f32 1.442695, %v235_v9  ;;  %p566_p4 = pneg %p565_p11  ;;  %p571_p10 = scmp.lt.s32.totalorder %s569_s8, %s563_s25 }
  0x63   : > { %v239_v14 = vmul.f32 1.442695, %v238_v10 }
  0x64   : > { %491 = vpow2.f32 %v230_v11  ;;  %p572_p12 = por %p571_p10, %p570_p7 }
  0x65   : > { %493 = vpow2.f32 %v233_v12 }
  0x66   : > { %495 = vpow2.f32 %v236_v13  ;;  %p573_p9 = pnand %p572_p12, %p566_p4 }
  0x67   : > { %497 = vpow2.f32 %v239_v14 }
  0x6e   : > { %v492_v15 = vpop.eup %491 }
  0x6f   : > { %v494_v16 = vpop.eup %493 }
  0x70   : > { %v496_v17 = vpop.eup %495  ;;  %v241_v18 = vadd.f32 %v494_v16, %v492_v15 }
  0x71   : > { %v498_v19 = vpop.eup %497 }
  0x72   : > { %v242_v20 = vadd.f32 %v496_v17, %v241_v18 }
  0x74   : > { %v243_v21 = vadd.f32 %v498_v19, %v242_v20 }
  0x76   : > { %499 = vlog2.f32 %v243_v21 }
  0x77   : > { %501 = vrcp.f32 %v243_v21 }
  0x80   : > { %v500_v23 = vpop.eup %499 }
  0x81   : > { %v502_v25 = vpop.eup %501  ;;  %v245_v29 = vmul.f32 0.6931472, %v500_v23 }
  0x82   : > { %v249_v26 = vmul.f32 %v502_v25, %v492_v15  ;;  %v253_v27 = vmul.f32 %v502_v25, %v494_v16  ;;  %v257_v28 = vmul.f32 %v502_v25, %v496_v17  ;;  %v261_v31 = vmul.f32 %v502_v25, %v498_v19 }
  0x83   : > { %v246_v42 = vadd.f32 %v245_v29, %v228_v6 }
  0x84   : > { %v252_v32 = vsel %vm250_vm0, %v249_v26, 0.0  ;;  %v266_v33 = vmul.f32 %v249_v26, %v249_v26  ;;  %v267_v34 = vmul.f32 %v253_v27, %v253_v27  ;;  %v269_v35 = vmul.f32 %v257_v28, %v257_v28 }
  0x85   : > { %v256_v36 = vsel %vm254_vm1, %v253_v27, %v252_v32  ;;  %v271_v40 = vmul.f32 %v261_v31, %v261_v31  ;;  %v265_v49 = vsub.f32 %v246_v42, %v263_v46 }
  0x86   : > { %v260_v38 = vsel %vm258_vm2, %v257_v28, %v256_v36  ;;  %v268_v39 = vadd.f32 %v267_v34, %v266_v33 }
  0x87   : > { %v264_v41 = vsel %vm262_vm3, %v261_v31, %v260_v38 }
  0x88   : > { %v270_v43 = vadd.f32 %v269_v35, %v268_v39  ;;  %v273_v44 = vsub.f32 1.0, %v264_v41  ;;  %v275_v45 = vmul.f32 %v264_v41, %v264_v41 }
  0x8a   : > { %v272_v47 = vadd.f32 %v271_v40, %v270_v43  ;;  %v274_v48 = vmul.f32 %v273_v44, %v273_v44 }
  0x8c   : > { %v276_v50 = vsub.f32 %v274_v48, %v275_v45 }
  0x8e   : > { %v277_v51 = vadd.f32 %v276_v50, %v272_v47 }
  0x90   : > { %v278_v52 = vmul.f32 %v277_v51, %v265_v49 }
  0x92   : > { %v280_v53 = vsel %vm279_vm4, %v278_v52, 0.0 }
  0x93   : > { %v281_v54 = vrot.slane %v280_v53, 4 }
  0x95   : > { %v282_v55 = vadd.f32 %v281_v54, %v280_v53 }
  0x97   : > { %v283_v56 = vrot.slane %v282_v55, 2 }
  0x99   : > { %v284_v57 = vadd.f32 %v283_v56, %v282_v55 }
  0x9b   : > { %v285_v58 = vrot.slane %v284_v57, 1 }
  0x9d   : > { %v286_v59 = vadd.f32 %v285_v58, %v284_v57 }
  0x9f   : > { %287 = vst [vmem:[%s217_s21] sm:$0x1] %v286_v59 }
  0xa0   : > { %576 = shalt.err (!%p573_p9)
}
  0xa1   : > { %s577_s16 = scalar_lea.hbm %s843_s29, 16  ;;  %s581_s4 = scalar_lea.hbm %s892_s2, 32 }
  0xa2   : > { %p578_p1 = scmp.ne.s32.totalorder %s843_s29, %s577_s16  ;;  %p582_p5 = scmp.lt.u32.totalorder %s843_s29, %s892_s2 }
  0xa3   : > { %p583_p13 = scmp.lt.u32.totalorder %s581_s4, %s577_s16  ;;  %p585_p8 = scmp.lt.u32.totalorder %s577_s16, %s843_s29 }
  0xa4   : > { %p579_p6 = pnand %p578_p1, %p904_p0 }
  0xa5   : > { %p584_p3 = por %p583_p13, %p582_p5 }
  0xa6   : > { %p580_p2 = pneg %p579_p6 }
  0xa7   : > { %p586_p11 = por %p585_p8, %p584_p3 }
  0xa9   : > { %p587_p4 = pnand %p586_p11, %p580_p2 }
  0xab   : > { %590 = shalt.err (!%p587_p4)
}
  0xac   : > { %426 = dma.vmem_to_hbm [thread:$0]  (%p904_p0), %s838_s26, 16, %s843_s29, %s289_s3  }
  0xad PF: > { %s314_s15 = sand.u32 1, %s629_s9   ;;  %p905_p7 = scmp.ne.s32.totalorder %s898_s24, 0 }
  0xae   : > { %p906_p10 = scmp.ge.s32.totalorder %s649_s14, 2  ;;  %s315_s19 = scalar_lea.sflag [#allocation4], %s314_s15 }
  0xb0   : > { %p436_p12 = pnand %p906_p10, %p905_p7 }
  0xb2   : > { %624 = dma.done.wait (!%p436_p12), %s315_s19, 16  }
  0xb3   : > { %626 = vsyncadd (!%p436_p12), %s315_s19, 4294967280  ;;  %s21_s14 = sadd.s32 1, %s649_s14   ;;  %s907_s9 = smov %s633_s10 }
  0xb4   : > { %p18_p9 = scmp.ge.s32.totalorder %s21_s14, 4   ;;  %s908_s10 = smov %s637_s11 }
  0xb5   : > { %s909_s11 = smov %s727_s23  ;;  %s910_s12 = smov %s645_s13 }
  0xb6   : > { %s911_s13 = smov %s913_s17  ;;  %20 = sbr.rel (!%p18_p9) target bundleno = 8 (0x8), region = 89 }
  0xbd   :  { %319 = vsyncpa [#allocation3], 1 }
  0xbe   :  { %321 = vsyncpa [#allocation3 + $0x1], 1 }
  0xbf   :  { %322 = vsyncpa [#allocation6], 1 }
  0xc0   :  { %324 = vsyncpa [#allocation6 + $0x1], 1 }
  0xc1   :  { %325 = vsyncpa [#allocation4], 1 }
  0xc2   :  { %327 = vsyncpa [#allocation4 + $0x1], 1 }

</bundles_post_ra>
